<compile_context>
chip_gen: v6e
topology: v6e:2x2x1
jax: 0.10.0
libtpu: 0.0.40
codegen_flags: <defaults>
</compile_context>

<pallas_src>
import functools
import math

import jax
import jax.numpy as jnp
from jax import lax
from jax.experimental import pallas as pl
from jax.experimental.pallas import tpu as pltpu


# ----------------------------------------------------------------------------
# Per-generation tiling / VMEM policy
# ----------------------------------------------------------------------------
def _vmem_capacity_bytes():
    try:
        return int(pltpu.get_tpu_info().vmem_capacity_bytes)
    except Exception:
        return 128 * 1024 * 1024  # v5e / v6e default


def _tiling_policy():
    vmem = _vmem_capacity_bytes()
    if vmem <= 64 * 1024 * 1024:          # v7x: 64 MiB per TensorCore
        return 128, 52 * 1024 * 1024      # smaller tiles, leave Mosaic headroom
    return 256, 96 * 1024 * 1024          # v5e / v6e: 128 MiB physical VMEM


def _choose_tile(T, max_tile):
    """Largest tile <= max_tile that divides T and is a multiple of 128 (lane-dense k^T),
    falling back to the whole sequence as a single tile."""
    for t in range(min(T, max_tile), 0, -1):
        if T % t == 0 and t % 128 == 0:
            return t
    return T  # e.g. short / odd sequence lengths: one tile covers everything


# ----------------------------------------------------------------------------
# Kernel 1: fused c_attn projection (hoisted out of the attention kernel)
# ----------------------------------------------------------------------------
def _qkv_proj_kernel(x_ref, w_ref, b_ref, q_ref, k_ref, v_ref, *, n_head, scale):
    """Grid = (batch, seq_tile).

    x_ref : [1, TP, nx]  bf16
    w_ref : [nx, 3*nx]   bf16 (single-buffered; constant across the grid)
    b_ref : [1, 3*nx]    f32
    q/k/v_ref : [1, TP, nx] bf16 outputs; q is pre-scaled by 1/sqrt(head_dim).
    """
    nx = x_ref.shape[2]
    D = nx // n_head

    x = x_ref[0]                                                      # [TP, nx] bf16
    qkv = jnp.dot(x, w_ref[...], preferred_element_type=jnp.float32) + b_ref[0]
    q = qkv[:, 0 * nx:1 * nx]
    k = qkv[:, 1 * nx:2 * nx]
    v = qkv[:, 2 * nx:3 * nx]
    if scale:
        # fold 1/sqrt(head_dim) into q once (instead of dividing the [TQ,TK] scores)
        q = q * jnp.float32(1.0 / math.sqrt(D))
    q_ref[0] = q.astype(jnp.bfloat16)
    k_ref[0] = k.astype(jnp.bfloat16)
    v_ref[0] = v.astype(jnp.bfloat16)


# ----------------------------------------------------------------------------
# Kernel 2: causal flash attention (online softmax) + fused c_proj
# ----------------------------------------------------------------------------
def _flash_attn_kernel(q_ref, k_ref, v_ref, wproj_ref, bproj_ref, o_ref,
                       m_scr, l_scr, acc_scr):
    """Grid = (batch, q_tile, kv_tile); kv_tile innermost ("arbitrary").

    q_ref    : [1, H, TQ, D]  bf16   (pre-scaled q)
    k_ref    : [1, H, D, TK]  bf16   (k^T: lane-dense along the sequence axis)
    v_ref    : [1, H, TK, D]  bf16
    wproj_ref: [H, D, nx]     bf16   (c_proj weight in head-contracted form)
    bproj_ref: [1, nx]        f32
    o_ref    : [1, TQ, nx]
    m/l/acc  : online-softmax running max / denom / unnormalized context (f32 scratch)
    """
    qi = pl.program_id(1)
    ki = pl.program_id(2)
    TQ = q_ref.shape[2]
    TK = v_ref.shape[2]

    @pl.when(ki == 0)
    def _():
        m_scr[...] = jnp.full(m_scr.shape, -1e30, jnp.float32)
        l_scr[...] = jnp.zeros(l_scr.shape, jnp.float32)
        acc_scr[...] = jnp.zeros(acc_scr.shape, jnp.float32)

    def flash_step(masked):
        q = q_ref[0]                                                  # [H, TQ, D] bf16
        kT = k_ref[0]                                                 # [H, D, TK] bf16
        v = v_ref[0]                                                  # [H, TK, D] bf16
        s = jnp.einsum('htd,hds->hts', q, kT,
                       preferred_element_type=jnp.float32)            # [H, TQ, TK] f32
        if masked:
            # Diagonal block (ki == qi and TQ == TK): the mask is block-local (col <= row).
            rows = lax.broadcasted_iota(jnp.int32, (TQ, TK), 0)
            cols = lax.broadcasted_iota(jnp.int32, (TQ, TK), 1)
            s = jnp.where((cols <= rows)[None], s, jnp.float32(-10000.0))
        m_prev = m_scr[...]
        m_new = jnp.maximum(m_prev, jnp.max(s, axis=-1, keepdims=True))
        alpha = jnp.exp(m_prev - m_new)
        p = jnp.exp(s - m_new)                                        # f32 exp (exact path)
        l_scr[...] = alpha * l_scr[...] + jnp.sum(p, axis=-1, keepdims=True)
        acc_scr[...] = alpha * acc_scr[...] + jnp.einsum(
            'hts,hsd->htd', p.astype(jnp.bfloat16), v,
            preferred_element_type=jnp.float32)
        m_scr[...] = m_new

    @pl.when(ki < qi)          # block strictly below the causal diagonal: no mask needed
    def _():
        flash_step(masked=False)

    @pl.when(ki == qi)         # diagonal block: apply mask, then finalize + fused c_proj
    def _():
        flash_step(masked=True)
        # Deferred normalization on the EUP slot; bf16 BEFORE feeding the MXU.
        ctx = (acc_scr[...] * pl.reciprocal(l_scr[...], approx=True)).astype(jnp.bfloat16)
        # merge_heads + c_proj as a head-batched MXU matmul (no [H,TQ,D]->[TQ,nx] repack):
        #   out[t, n] = sum_h sum_d ctx[h, t, d] * wproj[h, d, n]
        per_head = jnp.einsum('htd,hdn->htn', ctx, wproj_ref[...],
                              preferred_element_type=jnp.float32)     # [H, TQ, nx] f32
        o_ref[0] = (jnp.sum(per_head, axis=0) + bproj_ref[0]).astype(o_ref.dtype)
    # ki > qi: block is entirely above the causal diagonal -> compute skipped, and the
    # k/v index_maps clamp ki to qi so no extra DMA is issued for these grid steps.


# ----------------------------------------------------------------------------
# Wrapper
# ----------------------------------------------------------------------------
def attention_forward(x, w_attn, b_attn, w_proj, b_proj, *, n_head, scale=True):
    """x: [B, T, nx] float32.  Returns [B, T, nx] (eval-mode GPT-2 attention block)."""
    B, T, nx = x.shape
    assert nx % n_head == 0
    D = nx // n_head

    max_tile, vmem_limit = _tiling_policy()
    TQ = _choose_tile(T, max_tile)        # query tile
    TK = TQ                               # kv tile (== TQ so the diagonal block is ki == qi)
    NQ = T // TQ
    NK = T // TK

    # bf16 inputs/weights (MXU-native, halves HBM/VMEM traffic); biases stay f32, 2-D.
    x_bf = x.astype(jnp.bfloat16)
    w_attn_bf = w_attn.astype(jnp.bfloat16)
    w_proj_bf = w_proj.astype(jnp.bfloat16)
    b_attn2 = b_attn.reshape(1, -1).astype(jnp.float32)
    b_proj2 = b_proj.reshape(1, -1).astype(jnp.float32)

    # ---- kernel 1: c_attn projection ----
    q, k, v = pl.pallas_call(
        functools.partial(_qkv_proj_kernel, n_head=n_head, scale=scale),
        out_shape=(
            jax.ShapeDtypeStruct((B, T, nx), jnp.bfloat16),   # q (pre-scaled)
            jax.ShapeDtypeStruct((B, T, nx), jnp.bfloat16),   # k
            jax.ShapeDtypeStruct((B, T, nx), jnp.bfloat16),   # v
        ),
        grid_spec=pltpu.PrefetchScalarGridSpec(
            num_scalar_prefetch=0,
            grid=(B, NQ),
            in_specs=[
                pl.BlockSpec((1, TQ, nx), lambda b, ti: (b, ti, 0)),
                pl.BlockSpec((nx, 3 * nx), lambda b, ti: (0, 0),
                             pipeline_mode=pl.Buffered(1)),            # constant: 1 buffer
                pl.BlockSpec((1, 3 * nx), lambda b, ti: (0, 0),
                             pipeline_mode=pl.Buffered(1)),
            ],
            out_specs=(
                pl.BlockSpec((1, TQ, nx), lambda b, ti: (b, ti, 0)),
                pl.BlockSpec((1, TQ, nx), lambda b, ti: (b, ti, 0)),
                pl.BlockSpec((1, TQ, nx), lambda b, ti: (b, ti, 0)),
            ),
        ),
        compiler_params=pltpu.CompilerParams(
            dimension_semantics=("parallel", "parallel"),
            vmem_limit_bytes=vmem_limit,
        ),
    )(x_bf, w_attn_bf, b_attn2)

    # Head-major relayout in plain XLA (one cheap HBM pass; keeps the Pallas kernels free
    # of cross-lane repacks).  k is stored lane-dense along the sequence axis ([B,H,D,T]).
    def split_heads(t):
        return t.reshape(B, T, n_head, D).transpose(0, 2, 1, 3)       # [B, H, T, D]

    qh = split_heads(q)
    kh = jnp.transpose(split_heads(k), (0, 1, 3, 2))                   # [B, H, D, T]
    vh = split_heads(v)
    w_proj_h = w_proj_bf.reshape(n_head, D, nx)                        # [H, D, nx]

    # ---- kernel 2: flash causal attention + c_proj ----
    out = pl.pallas_call(
        _flash_attn_kernel,
        out_shape=jax.ShapeDtypeStruct((B, T, nx), x.dtype),
        grid_spec=pltpu.PrefetchScalarGridSpec(
            num_scalar_prefetch=0,
            grid=(B, NQ, NK),
            in_specs=[
                pl.BlockSpec((1, n_head, TQ, D), lambda b, qi, ki: (b, 0, qi, 0)),
                # clamp ki to qi: skipped (fully-masked) kv blocks re-use the diagonal
                # block already in VMEM, so no DMA is issued for them.
                pl.BlockSpec((1, n_head, D, TK),
                             lambda b, qi, ki: (b, 0, 0, jnp.minimum(ki, qi))),
                pl.BlockSpec((1, n_head, TK, D),
                             lambda b, qi, ki: (b, 0, jnp.minimum(ki, qi), 0)),
                pl.BlockSpec((n_head, D, nx), lambda b, qi, ki: (0, 0, 0),
                             pipeline_mode=pl.Buffered(1)),            # constant: 1 buffer
                pl.BlockSpec((1, nx), lambda b, qi, ki: (0, 0),
                             pipeline_mode=pl.Buffered(1)),
            ],
            out_specs=pl.BlockSpec((1, TQ, nx), lambda b, qi, ki: (b, qi, 0)),
            scratch_shapes=[
                pltpu.VMEM((n_head, TQ, 1), jnp.float32),   # m: running max
                pltpu.VMEM((n_head, TQ, 1), jnp.float32),   # l: running denominator
                pltpu.VMEM((n_head, TQ, D), jnp.float32),   # acc: unnormalized context
            ],
        ),
        compiler_params=pltpu.CompilerParams(
            # batch and q-tile axes are fully independent (projection hoisted, scratch
            # only carries across the kv axis) -> both parallel for megacore sharding.
            dimension_semantics=("parallel", "parallel", "arbitrary"),
            vmem_limit_bytes=vmem_limit,
        ),
    )(qh, kh, vh, w_proj_h, b_proj2)
    return out


# ----------------------------------------------------------------------------
# Pure-JAX reference (mirrors the PyTorch forward, eval mode)
# ----------------------------------------------------------------------------
def attention_reference(x, w_attn, b_attn, w_proj, b_proj, *, n_head, scale=True):
    B, T, nx = x.shape
    hd = nx // n_head
    qkv = x @ w_attn + b_attn
    q, k, v = jnp.split(qkv, 3, axis=-1)

    def split_heads(t):
        return t.reshape(B, T, n_head, hd).transpose(0, 2, 1, 3)

    q, k, v = split_heads(q), split_heads(k), split_heads(v)
    w = q @ k.transpose(0, 1, 3, 2)
    if scale:
        w = w / float(hd) ** 0.5
    mask = jnp.tril(jnp.ones((T, T), dtype=bool))
    w = jnp.where(mask, w, jnp.float32(-10000.0))
    w = jax.nn.softmax(w, axis=-1)
    a = (w @ v).transpose(0, 2, 1, 3).reshape(B, T, nx)
    return a @ w_proj + b_proj


if __name__ == "__main__":
    # Small config consistent with the module: nx (hidden) divisible by n_head.
    B, T, NX, N_HEAD = 2, 8, 32, 4
    SCALE = True

    key = jax.random.PRNGKey(0)
    kx, kw1, kb1, kw2, kb2 = jax.random.split(key, 5)

    x = jax.random.normal(kx, (B, T, NX), dtype=jnp.float32)
    # Conv1D-style init: weight ~ N(0, 0.02); small nonzero biases to exercise that path.
    w_attn = 0.02 * jax.random.normal(kw1, (NX, 3 * NX), dtype=jnp.float32)
    b_attn = 0.01 * jax.random.normal(kb1, (3 * NX,), dtype=jnp.float32)
    w_proj = 0.02 * jax.random.normal(kw2, (NX, NX), dtype=jnp.float32)
    b_proj = 0.01 * jax.random.normal(kb2, (NX,), dtype=jnp.float32)

    fwd = jax.jit(functools.partial(attention_forward, n_head=N_HEAD, scale=SCALE))
    out = jax.block_until_ready(fwd(x, w_attn, b_attn, w_proj, b_proj))

    ref = attention_reference(x, w_attn, b_attn, w_proj, b_proj,
                              n_head=N_HEAD, scale=SCALE)
    assert out.shape == (B, T, NX)
    # bf16 MXU inputs + approx reciprocal -> compare against the f32 reference with a
    # tolerance that covers bf16 quantization (~0.4% relative).
    assert jnp.allclose(out, ref, atol=2e-2, rtol=2e-2), "mismatch vs JAX reference"

    print("KERNEL_OK")
</pallas_src>

<mosaic_0001>
module attributes {stable_mosaic.version = 11 : i64} {
  func.func @_qkv_proj_kernel(%arg0: i32, %arg1: i32, %arg2: memref<1x8x32xbf16, #tpu.memory_space<vmem>>, %arg3: memref<32x96xbf16, #tpu.memory_space<vmem>>, %arg4: memref<1x96xf32, #tpu.memory_space<vmem>>, %arg5: memref<1x8x32xbf16, #tpu.memory_space<vmem>>, %arg6: memref<1x8x32xbf16, #tpu.memory_space<vmem>>, %arg7: memref<1x8x32xbf16, #tpu.memory_space<vmem>>) attributes {dimension_semantics = [#tpu.dimension_semantics<parallel>, #tpu.dimension_semantics<parallel>], iteration_bounds = array<i64: 2, 1>, scalar_prefetch = 0 : i64, scratch_operands = 0 : i64, tpu.core_type = #tpu.core_type<tc>, window_params = [{transform_indices = @transform_0, window_bounds = array<i64: 1, 8, 32>}, {pipeline_mode = #tpu.pipeline_mode<synchronous>, transform_indices = @transform_1, window_bounds = array<i64: 32, 96>}, {pipeline_mode = #tpu.pipeline_mode<synchronous>, transform_indices = @transform_2, window_bounds = array<i64: 1, 96>}, {transform_indices = @transform_3, window_bounds = array<i64: 1, 8, 32>}, {transform_indices = @transform_4, window_bounds = array<i64: 1, 8, 32>}, {transform_indices = @transform_5, window_bounds = array<i64: 1, 8, 32>}]} {
    %c0 = arith.constant 0 : index
    %c0_0 = arith.constant 0 : index
    %c0_1 = arith.constant 0 : index
    %0 = vector.load %arg2[%c0, %c0_0, %c0_1] : memref<1x8x32xbf16, #tpu.memory_space<vmem>>, vector<1x8x32xbf16>
    %1 = vector.shape_cast %0 : vector<1x8x32xbf16> to vector<8x32xbf16>
    %c0_2 = arith.constant 0 : index
    %c0_3 = arith.constant 0 : index
    %2 = vector.load %arg3[%c0_2, %c0_3] : memref<32x96xbf16, #tpu.memory_space<vmem>>, vector<32x96xbf16>
    %cst = arith.constant dense<0.000000e+00> : vector<8x96xf32>
    %3 = tpu.matmul %1, %2, %cst {dimension_numbers = #tpu.dot_dimension_numbers<[1], [0], [0], [1], [0, 0, 1, 1], [], []>} : vector<8x32xbf16>, vector<32x96xbf16>, vector<8x96xf32> -> vector<8x96xf32>
    %c0_4 = arith.constant 0 : index
    %c0_5 = arith.constant 0 : index
    %4 = vector.load %arg4[%c0_4, %c0_5] : memref<1x96xf32, #tpu.memory_space<vmem>>, vector<1x96xf32>
    %5 = vector.shape_cast %4 : vector<1x96xf32> to vector<96xf32>
    %6 = vector.shape_cast %5 : vector<96xf32> to vector<1x96xf32>
    %7 = vector.broadcast %6 : vector<1x96xf32> to vector<8x96xf32>
    %8 = arith.addf %3, %7 : vector<8x96xf32>
    %9 = vector.extract_strided_slice %8 {offsets = [0, 0], sizes = [8, 32], strides = [1, 1]} : vector<8x96xf32> to vector<8x32xf32>
    %10 = vector.extract_strided_slice %8 {offsets = [0, 32], sizes = [8, 32], strides = [1, 1]} : vector<8x96xf32> to vector<8x32xf32>
    %11 = vector.extract_strided_slice %8 {offsets = [0, 64], sizes = [8, 32], strides = [1, 1]} : vector<8x96xf32> to vector<8x32xf32>
    %cst_6 = arith.constant 0.353553385 : f32
    %12 = vector.broadcast %cst_6 : f32 to vector<8x32xf32>
    %13 = arith.mulf %9, %12 : vector<8x32xf32>
    %14 = arith.truncf %13 : vector<8x32xf32> to vector<8x32xbf16>
    %c0_7 = arith.constant 0 : index
    %c0_8 = arith.constant 0 : index
    %c0_9 = arith.constant 0 : index
    %15 = vector.load %arg5[%c0_7, %c0_8, %c0_9] : memref<1x8x32xbf16, #tpu.memory_space<vmem>>, vector<1x8x32xbf16>
    %16 = vector.shape_cast %15 : vector<1x8x32xbf16> to vector<8x32xbf16>
    %17 = vector.shape_cast %14 : vector<8x32xbf16> to vector<1x8x32xbf16>
    tpu.vector_store %arg5[%c0_7, %c0_8, %c0_9], %17 {strides = array<i32>} : memref<1x8x32xbf16, #tpu.memory_space<vmem>>, vector<1x8x32xbf16>,
    %18 = arith.truncf %10 : vector<8x32xf32> to vector<8x32xbf16>
    %c0_10 = arith.constant 0 : index
    %c0_11 = arith.constant 0 : index
    %c0_12 = arith.constant 0 : index
    %19 = vector.load %arg6[%c0_10, %c0_11, %c0_12] : memref<1x8x32xbf16, #tpu.memory_space<vmem>>, vector<1x8x32xbf16>
    %20 = vector.shape_cast %19 : vector<1x8x32xbf16> to vector<8x32xbf16>
    %21 = vector.shape_cast %18 : vector<8x32xbf16> to vector<1x8x32xbf16>
    tpu.vector_store %arg6[%c0_10, %c0_11, %c0_12], %21 {strides = array<i32>} : memref<1x8x32xbf16, #tpu.memory_space<vmem>>, vector<1x8x32xbf16>,
    %22 = arith.truncf %11 : vector<8x32xf32> to vector<8x32xbf16>
    %c0_13 = arith.constant 0 : index
    %c0_14 = arith.constant 0 : index
    %c0_15 = arith.constant 0 : index
    %23 = vector.load %arg7[%c0_13, %c0_14, %c0_15] : memref<1x8x32xbf16, #tpu.memory_space<vmem>>, vector<1x8x32xbf16>
    %24 = vector.shape_cast %23 : vector<1x8x32xbf16> to vector<8x32xbf16>
    %25 = vector.shape_cast %22 : vector<8x32xbf16> to vector<1x8x32xbf16>
    tpu.vector_store %arg7[%c0_13, %c0_14, %c0_15], %25 {strides = array<i32>} : memref<1x8x32xbf16, #tpu.memory_space<vmem>>, vector<1x8x32xbf16>,
    return
  }
  func.func @transform_0(%arg0: i32, %arg1: i32) -> (i32, i32, i32) {
    %c0_i32 = arith.constant 0 : i32
    %c0_i32_0 = arith.constant 0 : i32
    return %arg0, %arg1, %c0_i32 : i32, i32, i32
  }
  func.func @transform_1(%arg0: i32, %arg1: i32) -> (i32, i32) {
    %c0_i32 = arith.constant 0 : i32
    %c0_i32_0 = arith.constant 0 : i32
    %c0_i32_1 = arith.constant 0 : i32
    return %c0_i32, %c0_i32_0 : i32, i32
  }
  func.func @transform_2(%arg0: i32, %arg1: i32) -> (i32, i32) {
    %c0_i32 = arith.constant 0 : i32
    %c0_i32_0 = arith.constant 0 : i32
    %c0_i32_1 = arith.constant 0 : i32
    return %c0_i32, %c0_i32_0 : i32, i32
  }
  func.func @transform_3(%arg0: i32, %arg1: i32) -> (i32, i32, i32) {
    %c0_i32 = arith.constant 0 : i32
    %c0_i32_0 = arith.constant 0 : i32
    return %arg0, %arg1, %c0_i32 : i32, i32, i32
  }
  func.func @transform_4(%arg0: i32, %arg1: i32) -> (i32, i32, i32) {
    %c0_i32 = arith.constant 0 : i32
    %c0_i32_0 = arith.constant 0 : i32
    return %arg0, %arg1, %c0_i32 : i32, i32, i32
  }
  func.func @transform_5(%arg0: i32, %arg1: i32) -> (i32, i32, i32) {
    %c0_i32 = arith.constant 0 : i32
    %c0_i32_0 = arith.constant 0 : i32
    return %arg0, %arg1, %c0_i32 : i32, i32, i32
  }
}

module attributes {stable_mosaic.version = 11 : i64} {
  func.func @_flash_attn_kernel(%arg0: i32, %arg1: i32, %arg2: i32, %arg3: memref<1x4x8x8xbf16, #tpu.memory_space<vmem>>, %arg4: memref<1x4x8x8xbf16, #tpu.memory_space<vmem>>, %arg5: memref<1x4x8x8xbf16, #tpu.memory_space<vmem>>, %arg6: memref<4x8x32xbf16, #tpu.memory_space<vmem>>, %arg7: memref<1x32xf32, #tpu.memory_space<vmem>>, %arg8: memref<1x8x32xf32, #tpu.memory_space<vmem>>, %arg9: memref<4x8x1xf32, #tpu.memory_space<vmem>>, %arg10: memref<4x8x1xf32, #tpu.memory_space<vmem>>, %arg11: memref<4x8x8xf32, #tpu.memory_space<vmem>>) attributes {dimension_semantics = [#tpu.dimension_semantics<parallel>, #tpu.dimension_semantics<parallel>, #tpu.dimension_semantics<arbitrary>], iteration_bounds = array<i64: 2, 1, 1>, scalar_prefetch = 0 : i64, scratch_operands = 3 : i64, tpu.core_type = #tpu.core_type<tc>, window_params = [{transform_indices = @transform_0, window_bounds = array<i64: 1, 4, 8, 8>}, {transform_indices = @transform_1, window_bounds = array<i64: 1, 4, 8, 8>}, {transform_indices = @transform_2, window_bounds = array<i64: 1, 4, 8, 8>}, {pipeline_mode = #tpu.pipeline_mode<synchronous>, transform_indices = @transform_3, window_bounds = array<i64: 4, 8, 32>}, {pipeline_mode = #tpu.pipeline_mode<synchronous>, transform_indices = @transform_4, window_bounds = array<i64: 1, 32>}, {transform_indices = @transform_5, window_bounds = array<i64: 1, 8, 32>}]} {
    %c0_i32 = arith.constant 0 : i32
    %0 = arith.cmpi eq, %arg2, %c0_i32 : i32
    %1 = arith.extui %0 : i1 to i32
    %c0_i32_0 = arith.constant 0 : i32
    %2 = arith.cmpi ne, %1, %c0_i32_0 : i32
    scf.if %2 {
      %cst = arith.constant -1.000000e+30 : f32
      %9 = vector.broadcast %cst : f32 to vector<4x8x1xf32>
      %c0 = arith.constant 0 : index
      %c0_3 = arith.constant 0 : index
      %c0_4 = arith.constant 0 : index
      %10 = vector.load %arg9[%c0, %c0_3, %c0_4] : memref<4x8x1xf32, #tpu.memory_space<vmem>>, vector<4x8x1xf32>
      tpu.vector_store %arg9[%c0, %c0_3, %c0_4], %9 {strides = array<i32>} : memref<4x8x1xf32, #tpu.memory_space<vmem>>, vector<4x8x1xf32>,
      %cst_5 = arith.constant 0.000000e+00 : f32
      %11 = vector.broadcast %cst_5 : f32 to vector<4x8x1xf32>
      %c0_6 = arith.constant 0 : index
      %c0_7 = arith.constant 0 : index
      %c0_8 = arith.constant 0 : index
      %12 = vector.load %arg10[%c0_6, %c0_7, %c0_8] : memref<4x8x1xf32, #tpu.memory_space<vmem>>, vector<4x8x1xf32>
      tpu.vector_store %arg10[%c0_6, %c0_7, %c0_8], %11 {strides = array<i32>} : memref<4x8x1xf32, #tpu.memory_space<vmem>>, vector<4x8x1xf32>,
      %cst_9 = arith.constant 0.000000e+00 : f32
      %13 = vector.broadcast %cst_9 : f32 to vector<4x8x8xf32>
      %c0_10 = arith.constant 0 : index
      %c0_11 = arith.constant 0 : index
      %c0_12 = arith.constant 0 : index
      %14 = vector.load %arg11[%c0_10, %c0_11, %c0_12] : memref<4x8x8xf32, #tpu.memory_space<vmem>>, vector<4x8x8xf32>
      tpu.vector_store %arg11[%c0_10, %c0_11, %c0_12], %13 {strides = array<i32>} : memref<4x8x8xf32, #tpu.memory_space<vmem>>, vector<4x8x8xf32>,
    } else {
    }
    %3 = arith.cmpi slt, %arg2, %arg1 : i32
    %4 = arith.extui %3 : i1 to i32
    %c0_i32_1 = arith.constant 0 : i32
    %5 = arith.cmpi ne, %4, %c0_i32_1 : i32
    scf.if %5 {
      %c0 = arith.constant 0 : index
      %c0_3 = arith.constant 0 : index
      %c0_4 = arith.constant 0 : index
      %c0_5 = arith.constant 0 : index
      %9 = vector.load %arg3[%c0, %c0_3, %c0_4, %c0_5] : memref<1x4x8x8xbf16, #tpu.memory_space<vmem>>, vector<1x4x8x8xbf16>
      %10 = vector.shape_cast %9 : vector<1x4x8x8xbf16> to vector<4x8x8xbf16>
      %c0_6 = arith.constant 0 : index
      %c0_7 = arith.constant 0 : index
      %c0_8 = arith.constant 0 : index
      %c0_9 = arith.constant 0 : index
      %11 = vector.load %arg4[%c0_6, %c0_7, %c0_8, %c0_9] : memref<1x4x8x8xbf16, #tpu.memory_space<vmem>>, vector<1x4x8x8xbf16>
      %12 = vector.shape_cast %11 : vector<1x4x8x8xbf16> to vector<4x8x8xbf16>
      %c0_10 = arith.constant 0 : index
      %c0_11 = arith.constant 0 : index
      %c0_12 = arith.constant 0 : index
      %c0_13 = arith.constant 0 : index
      %13 = vector.load %arg5[%c0_10, %c0_11, %c0_12, %c0_13] : memref<1x4x8x8xbf16, #tpu.memory_space<vmem>>, vector<1x4x8x8xbf16>
      %14 = vector.shape_cast %13 : vector<1x4x8x8xbf16> to vector<4x8x8xbf16>
      "tpu.trace_start"() <{level = 10 : i32, message = "htd,hds->hts"}> : () -> ()
      %cst = arith.constant dense<0.000000e+00> : vector<4x8x8xf32>
      %15 = tpu.matmul %10, %12, %cst {dimension_numbers = #tpu.dot_dimension_numbers<[2], [1], [1], [2], [0, 0, 0, 1, 1, 2], [0], [0]>} : vector<4x8x8xbf16>, vector<4x8x8xbf16>, vector<4x8x8xf32> -> vector<4x8x8xf32>
      "tpu.trace_stop"() : () -> ()
      %c0_14 = arith.constant 0 : index
      %c0_15 = arith.constant 0 : index
      %c0_16 = arith.constant 0 : index
      %16 = vector.load %arg9[%c0_14, %c0_15, %c0_16] : memref<4x8x1xf32, #tpu.memory_space<vmem>>, vector<4x8x1xf32>
      %cst_17 = arith.constant dense<0xFF800000> : vector<4x8xf32>
      %17 = vector.multi_reduction <maximumf>, %15, %cst_17 [2] : vector<4x8x8xf32> to vector<4x8xf32>
      %18 = vector.shape_cast %17 : vector<4x8xf32> to vector<4x8x1xf32>
      %19 = arith.maximumf %16, %18 : vector<4x8x1xf32>
      %20 = arith.subf %16, %19 : vector<4x8x1xf32>
      %21 = math.exp %20 : vector<4x8x1xf32>
      %22 = vector.broadcast %19 : vector<4x8x1xf32> to vector<4x8x8xf32>
      %23 = arith.subf %15, %22 : vector<4x8x8xf32>
      %24 = math.exp %23 : vector<4x8x8xf32>
      %c0_18 = arith.constant 0 : index
      %c0_19 = arith.constant 0 : index
      %c0_20 = arith.constant 0 : index
      %25 = vector.load %arg10[%c0_18, %c0_19, %c0_20] : memref<4x8x1xf32, #tpu.memory_space<vmem>>, vector<4x8x1xf32>
      %26 = arith.mulf %21, %25 : vector<4x8x1xf32>
      %cst_21 = arith.constant dense<0.000000e+00> : vector<4x8xf32>
      %27 = vector.multi_reduction <add>, %24, %cst_21 [2] : vector<4x8x8xf32> to vector<4x8xf32>
      %28 = vector.shape_cast %27 : vector<4x8xf32> to vector<4x8x1xf32>
      %29 = arith.addf %26, %28 : vector<4x8x1xf32>
      %c0_22 = arith.constant 0 : index
      %c0_23 = arith.constant 0 : index
      %c0_24 = arith.constant 0 : index
      %30 = vector.load %arg10[%c0_22, %c0_23, %c0_24] : memref<4x8x1xf32, #tpu.memory_space<vmem>>, vector<4x8x1xf32>
      tpu.vector_store %arg10[%c0_22, %c0_23, %c0_24], %29 {strides = array<i32>} : memref<4x8x1xf32, #tpu.memory_space<vmem>>, vector<4x8x1xf32>,
      %c0_25 = arith.constant 0 : index
      %c0_26 = arith.constant 0 : index
      %c0_27 = arith.constant 0 : index
      %31 = vector.load %arg11[%c0_25, %c0_26, %c0_27] : memref<4x8x8xf32, #tpu.memory_space<vmem>>, vector<4x8x8xf32>
      %32 = vector.broadcast %21 : vector<4x8x1xf32> to vector<4x8x8xf32>
      %33 = arith.mulf %32, %31 : vector<4x8x8xf32>
      %34 = arith.truncf %24 : vector<4x8x8xf32> to vector<4x8x8xbf16>
      "tpu.trace_start"() <{level = 10 : i32, message = "hts,hsd->htd"}> : () -> ()
      %cst_28 = arith.constant dense<0.000000e+00> : vector<4x8x8xf32>
      %35 = tpu.matmul %34, %14, %cst_28 {dimension_numbers = #tpu.dot_dimension_numbers<[2], [1], [1], [2], [0, 0, 0, 1, 1, 2], [0], [0]>} : vector<4x8x8xbf16>, vector<4x8x8xbf16>, vector<4x8x8xf32> -> vector<4x8x8xf32>
      "tpu.trace_stop"() : () -> ()
      %36 = arith.addf %33, %35 : vector<4x8x8xf32>
      %c0_29 = arith.constant 0 : index
      %c0_30 = arith.constant 0 : index
      %c0_31 = arith.constant 0 : index
      %37 = vector.load %arg11[%c0_29, %c0_30, %c0_31] : memref<4x8x8xf32, #tpu.memory_space<vmem>>, vector<4x8x8xf32>
      tpu.vector_store %arg11[%c0_29, %c0_30, %c0_31], %36 {strides = array<i32>} : memref<4x8x8xf32, #tpu.memory_space<vmem>>, vector<4x8x8xf32>,
      %c0_32 = arith.constant 0 : index
      %c0_33 = arith.constant 0 : index
      %c0_34 = arith.constant 0 : index
      %38 = vector.load %arg9[%c0_32, %c0_33, %c0_34] : memref<4x8x1xf32, #tpu.memory_space<vmem>>, vector<4x8x1xf32>
      tpu.vector_store %arg9[%c0_32, %c0_33, %c0_34], %19 {strides = array<i32>} : memref<4x8x1xf32, #tpu.memory_space<vmem>>, vector<4x8x1xf32>,
    } else {
    }
    %6 = arith.cmpi eq, %arg2, %arg1 : i32
    %7 = arith.extui %6 : i1 to i32
    %c0_i32_2 = arith.constant 0 : i32
    %8 = arith.cmpi ne, %7, %c0_i32_2 : i32
    scf.if %8 {
      %c0 = arith.constant 0 : index
      %c0_3 = arith.constant 0 : index
      %c0_4 = arith.constant 0 : index
      %c0_5 = arith.constant 0 : index
      %9 = vector.load %arg3[%c0, %c0_3, %c0_4, %c0_5] : memref<1x4x8x8xbf16, #tpu.memory_space<vmem>>, vector<1x4x8x8xbf16>
      %10 = vector.shape_cast %9 : vector<1x4x8x8xbf16> to vector<4x8x8xbf16>
      %c0_6 = arith.constant 0 : index
      %c0_7 = arith.constant 0 : index
      %c0_8 = arith.constant 0 : index
      %c0_9 = arith.constant 0 : index
      %11 = vector.load %arg4[%c0_6, %c0_7, %c0_8, %c0_9] : memref<1x4x8x8xbf16, #tpu.memory_space<vmem>>, vector<1x4x8x8xbf16>
      %12 = vector.shape_cast %11 : vector<1x4x8x8xbf16> to vector<4x8x8xbf16>
      %c0_10 = arith.constant 0 : index
      %c0_11 = arith.constant 0 : index
      %c0_12 = arith.constant 0 : index
      %c0_13 = arith.constant 0 : index
      %13 = vector.load %arg5[%c0_10, %c0_11, %c0_12, %c0_13] : memref<1x4x8x8xbf16, #tpu.memory_space<vmem>>, vector<1x4x8x8xbf16>
      %14 = vector.shape_cast %13 : vector<1x4x8x8xbf16> to vector<4x8x8xbf16>
      "tpu.trace_start"() <{level = 10 : i32, message = "htd,hds->hts"}> : () -> ()
      %cst = arith.constant dense<0.000000e+00> : vector<4x8x8xf32>
      %15 = tpu.matmul %10, %12, %cst {dimension_numbers = #tpu.dot_dimension_numbers<[2], [1], [1], [2], [0, 0, 0, 1, 1, 2], [0], [0]>} : vector<4x8x8xbf16>, vector<4x8x8xbf16>, vector<4x8x8xf32> -> vector<4x8x8xf32>
      "tpu.trace_stop"() : () -> ()
      %16 = tpu.iota {dimensions = array<i32: 0>} : vector<8x8xi32>
      %17 = tpu.iota {dimensions = array<i32: 1>} : vector<8x8xi32>
      %18 = arith.cmpi sle, %17, %16 : vector<8x8xi32>
      %19 = vector.shape_cast %18 : vector<8x8xi1> to vector<1x8x8xi1>
      %cst_14 = arith.constant -1.000000e+04 : f32
      %20 = vector.shape_cast %19 : vector<1x8x8xi1> to vector<1x8x8xi1>
      %21 = vector.broadcast %20 : vector<1x8x8xi1> to vector<4x8x8xi1>
      %22 = vector.broadcast %cst_14 : f32 to vector<4x8x8xf32>
      %23 = arith.select %21, %15, %22 : vector<4x8x8xi1>, vector<4x8x8xf32>
      %c0_15 = arith.constant 0 : index
      %c0_16 = arith.constant 0 : index
      %c0_17 = arith.constant 0 : index
      %24 = vector.load %arg9[%c0_15, %c0_16, %c0_17] : memref<4x8x1xf32, #tpu.memory_space<vmem>>, vector<4x8x1xf32>
      %cst_18 = arith.constant dense<0xFF800000> : vector<4x8xf32>
      %25 = vector.multi_reduction <maximumf>, %23, %cst_18 [2] : vector<4x8x8xf32> to vector<4x8xf32>
      %26 = vector.shape_cast %25 : vector<4x8xf32> to vector<4x8x1xf32>
      %27 = arith.maximumf %24, %26 : vector<4x8x1xf32>
      %28 = arith.subf %24, %27 : vector<4x8x1xf32>
      %29 = math.exp %28 : vector<4x8x1xf32>
      %30 = vector.broadcast %27 : vector<4x8x1xf32> to vector<4x8x8xf32>
      %31 = arith.subf %23, %30 : vector<4x8x8xf32>
      %32 = math.exp %31 : vector<4x8x8xf32>
      %c0_19 = arith.constant 0 : index
      %c0_20 = arith.constant 0 : index
      %c0_21 = arith.constant 0 : index
      %33 = vector.load %arg10[%c0_19, %c0_20, %c0_21] : memref<4x8x1xf32, #tpu.memory_space<vmem>>, vector<4x8x1xf32>
      %34 = arith.mulf %29, %33 : vector<4x8x1xf32>
      %cst_22 = arith.constant dense<0.000000e+00> : vector<4x8xf32>
      %35 = vector.multi_reduction <add>, %32, %cst_22 [2] : vector<4x8x8xf32> to vector<4x8xf32>
      %36 = vector.shape_cast %35 : vector<4x8xf32> to vector<4x8x1xf32>
      %37 = arith.addf %34, %36 : vector<4x8x1xf32>
      %c0_23 = arith.constant 0 : index
      %c0_24 = arith.constant 0 : index
      %c0_25 = arith.constant 0 : index
      %38 = vector.load %arg10[%c0_23, %c0_24, %c0_25] : memref<4x8x1xf32, #tpu.memory_space<vmem>>, vector<4x8x1xf32>
      tpu.vector_store %arg10[%c0_23, %c0_24, %c0_25], %37 {strides = array<i32>} : memref<4x8x1xf32, #tpu.memory_space<vmem>>, vector<4x8x1xf32>,
      %c0_26 = arith.constant 0 : index
      %c0_27 = arith.constant 0 : index
      %c0_28 = arith.constant 0 : index
      %39 = vector.load %arg11[%c0_26, %c0_27, %c0_28] : memref<4x8x8xf32, #tpu.memory_space<vmem>>, vector<4x8x8xf32>
      %40 = vector.broadcast %29 : vector<4x8x1xf32> to vector<4x8x8xf32>
      %41 = arith.mulf %40, %39 : vector<4x8x8xf32>
      %42 = arith.truncf %32 : vector<4x8x8xf32> to vector<4x8x8xbf16>
      "tpu.trace_start"() <{level = 10 : i32, message = "hts,hsd->htd"}> : () -> ()
      %cst_29 = arith.constant dense<0.000000e+00> : vector<4x8x8xf32>
      %43 = tpu.matmul %42, %14, %cst_29 {dimension_numbers = #tpu.dot_dimension_numbers<[2], [1], [1], [2], [0, 0, 0, 1, 1, 2], [0], [0]>} : vector<4x8x8xbf16>, vector<4x8x8xbf16>, vector<4x8x8xf32> -> vector<4x8x8xf32>
      "tpu.trace_stop"() : () -> ()
      %44 = arith.addf %41, %43 : vector<4x8x8xf32>
      %c0_30 = arith.constant 0 : index
      %c0_31 = arith.constant 0 : index
      %c0_32 = arith.constant 0 : index
      %45 = vector.load %arg11[%c0_30, %c0_31, %c0_32] : memref<4x8x8xf32, #tpu.memory_space<vmem>>, vector<4x8x8xf32>
      tpu.vector_store %arg11[%c0_30, %c0_31, %c0_32], %44 {strides = array<i32>} : memref<4x8x8xf32, #tpu.memory_space<vmem>>, vector<4x8x8xf32>,
      %c0_33 = arith.constant 0 : index
      %c0_34 = arith.constant 0 : index
      %c0_35 = arith.constant 0 : index
      %46 = vector.load %arg9[%c0_33, %c0_34, %c0_35] : memref<4x8x1xf32, #tpu.memory_space<vmem>>, vector<4x8x1xf32>
      tpu.vector_store %arg9[%c0_33, %c0_34, %c0_35], %27 {strides = array<i32>} : memref<4x8x1xf32, #tpu.memory_space<vmem>>, vector<4x8x1xf32>,
      %c0_36 = arith.constant 0 : index
      %c0_37 = arith.constant 0 : index
      %c0_38 = arith.constant 0 : index
      %47 = vector.load %arg11[%c0_36, %c0_37, %c0_38] : memref<4x8x8xf32, #tpu.memory_space<vmem>>, vector<4x8x8xf32>
      %c0_39 = arith.constant 0 : index
      %c0_40 = arith.constant 0 : index
      %c0_41 = arith.constant 0 : index
      %48 = vector.load %arg10[%c0_39, %c0_40, %c0_41] : memref<4x8x1xf32, #tpu.memory_space<vmem>>, vector<4x8x1xf32>
      %49 = tpu.reciprocal %48 {approx = true} : vector<4x8x1xf32> -> vector<4x8x1xf32>
      %50 = vector.broadcast %49 : vector<4x8x1xf32> to vector<4x8x8xf32>
      %51 = arith.mulf %47, %50 : vector<4x8x8xf32>
      %52 = arith.truncf %51 : vector<4x8x8xf32> to vector<4x8x8xbf16>
      %c0_42 = arith.constant 0 : index
      %c0_43 = arith.constant 0 : index
      %c0_44 = arith.constant 0 : index
      %53 = vector.load %arg6[%c0_42, %c0_43, %c0_44] : memref<4x8x32xbf16, #tpu.memory_space<vmem>>, vector<4x8x32xbf16>
      "tpu.trace_start"() <{level = 10 : i32, message = "htd,hdn->htn"}> : () -> ()
      %cst_45 = arith.constant dense<0.000000e+00> : vector<4x8x32xf32>
      %54 = tpu.matmul %52, %53, %cst_45 {dimension_numbers = #tpu.dot_dimension_numbers<[2], [1], [1], [2], [0, 0, 0, 1, 1, 2], [0], [0]>} : vector<4x8x8xbf16>, vector<4x8x32xbf16>, vector<4x8x32xf32> -> vector<4x8x32xf32>
      "tpu.trace_stop"() : () -> ()
      %cst_46 = arith.constant dense<0.000000e+00> : vector<8x32xf32>
      %55 = vector.multi_reduction <add>, %54, %cst_46 [0] : vector<4x8x32xf32> to vector<8x32xf32>
      %c0_47 = arith.constant 0 : index
      %c0_48 = arith.constant 0 : index
      %56 = vector.load %arg7[%c0_47, %c0_48] : memref<1x32xf32, #tpu.memory_space<vmem>>, vector<1x32xf32>
      %57 = vector.shape_cast %56 : vector<1x32xf32> to vector<32xf32>
      %58 = vector.shape_cast %57 : vector<32xf32> to vector<1x32xf32>
      %59 = vector.broadcast %58 : vector<1x32xf32> to vector<8x32xf32>
      %60 = arith.addf %55, %59 : vector<8x32xf32>
      %c0_49 = arith.constant 0 : index
      %c0_50 = arith.constant 0 : index
      %c0_51 = arith.constant 0 : index
      %61 = vector.load %arg8[%c0_49, %c0_50, %c0_51] : memref<1x8x32xf32, #tpu.memory_space<vmem>>, vector<1x8x32xf32>
      %62 = vector.shape_cast %61 : vector<1x8x32xf32> to vector<8x32xf32>
      %63 = vector.shape_cast %60 : vector<8x32xf32> to vector<1x8x32xf32>
      tpu.vector_store %arg8[%c0_49, %c0_50, %c0_51], %63 {strides = array<i32>} : memref<1x8x32xf32, #tpu.memory_space<vmem>>, vector<1x8x32xf32>,
    } else {
    }
    return
  }
  func.func @transform_0(%arg0: i32, %arg1: i32, %arg2: i32) -> (i32, i32, i32, i32) {
    %c0_i32 = arith.constant 0 : i32
    %c0_i32_0 = arith.constant 0 : i32
    %c0_i32_1 = arith.constant 0 : i32
    return %arg0, %c0_i32, %arg1, %c0_i32_0 : i32, i32, i32, i32
  }
  func.func @transform_1(%arg0: i32, %arg1: i32, %arg2: i32) -> (i32, i32, i32, i32) {
    %0 = arith.minsi %arg2, %arg1 : i32
    %c0_i32 = arith.constant 0 : i32
    %c0_i32_0 = arith.constant 0 : i32
    %c0_i32_1 = arith.constant 0 : i32
    return %arg0, %c0_i32, %c0_i32_0, %0 : i32, i32, i32, i32
  }
  func.func @transform_2(%arg0: i32, %arg1: i32, %arg2: i32) -> (i32, i32, i32, i32) {
    %0 = arith.minsi %arg2, %arg1 : i32
    %c0_i32 = arith.constant 0 : i32
    %c0_i32_0 = arith.constant 0 : i32
    %c0_i32_1 = arith.constant 0 : i32
    return %arg0, %c0_i32, %0, %c0_i32_0 : i32, i32, i32, i32
  }
  func.func @transform_3(%arg0: i32, %arg1: i32, %arg2: i32) -> (i32, i32, i32) {
    %c0_i32 = arith.constant 0 : i32
    %c0_i32_0 = arith.constant 0 : i32
    %c0_i32_1 = arith.constant 0 : i32
    %c0_i32_2 = arith.constant 0 : i32
    return %c0_i32, %c0_i32_0, %c0_i32_1 : i32, i32, i32
  }
  func.func @transform_4(%arg0: i32, %arg1: i32, %arg2: i32) -> (i32, i32) {
    %c0_i32 = arith.constant 0 : i32
    %c0_i32_0 = arith.constant 0 : i32
    %c0_i32_1 = arith.constant 0 : i32
    return %c0_i32, %c0_i32_0 : i32, i32
  }
  func.func @transform_5(%arg0: i32, %arg1: i32, %arg2: i32) -> (i32, i32, i32) {
    %c0_i32 = arith.constant 0 : i32
    %c0_i32_0 = arith.constant 0 : i32
    return %arg0, %arg1, %c0_i32 : i32, i32, i32
  }
}

</mosaic_0001>

<bundles_post_ra>
// kernel: attention_forward.2
= control target key start
LH: loop header
LB: loop body
LE: loop exit
PB: predicated region body
PF: predicated region fallthrough
CT: control target
= control target key end

     0   :  { %s645_s18 = smov 0   ;;  %s647_s19 = smov 0   ;;  %s693_s0 = inlined_call_operand.vmem [shape: bf16[2,8,32], index: 0, kind: input, shape index: {}]   ;;  %s694_s1 = inlined_call_operand.vmem [shape: bf16[32,96], index: 1, kind: input, shape index: {}]   ;;  %s695_s2 = inlined_call_operand.vmem [shape: f32[1,96], index: 2, kind: input, shape index: {}]   ;;  %s696_s3 = inlined_call_operand.vmem [shape: bf16[2,8,32], index: 3, kind: output, shape index: {0}]   ;;  %s697_s4 = inlined_call_operand.vmem [shape: bf16[2,8,32], index: 4, kind: output, shape index: {1}]   ;;  %s698_s5 = inlined_call_operand.vmem [shape: bf16[2,8,32], index: 5, kind: output, shape index: {2}]  }
   0x1   :  { %s649_s20 = smov 0  }
   0x2 LB: > { %s28_s21 = sadd.s32 1, %s605_s19  ;;  %p533_p0 = scmp.ge.s32.totalorder %s609_s20, 1  ;;  %s609_s20 = sphi %s649_s20, %s16_s20   ;;  %s605_s19 = sphi %s647_s19, %s700_s19   ;;  %s601_s18 = sphi %s645_s18, %s699_s18  }
   0x3   : > { %p30_p1 = scmp.ge.s32.totalorder %s28_s21, 2  ;;  %p214_p2 = scmp.lt.s32.totalorder %s609_s20, 3 }
   0x5   : > { %s702_s21 = smov (%p30_p1, %s28_s21), 0  ;;  %p215_p3 = pnand %p533_p0, %p214_p2 }
   0x6   : > { %p260_p4 = scmp.lt.s32.totalorder (!%p215_p3), %s601_s18, 1  ;;  %s613_s10 = smov (!%p215_p3), 96  }
   0x7   : > { %218 = sbr.rel (%p215_p3) target bundleno = 338 (0x152), region = 32  ;;  %s614_s11 = smov (!%p215_p3), 64  }
   0xc   : > { %v585_v0 = vld [vmem:[%s694_s1 + $0x8] sm:$0xff]   ;;  %v611_v1 = vmov 0.0   ;;  %v586_v2 = vld [vmem:[%s694_s1] sm:$0xff]   ;;  %vm612_vm0 = vmmov 0   ;;  %s704_s18 = smov (!%p260_p4, %s601_s18), 1  ;;  %vm313_vm1 = vcmask 261120  }
   0xd   : > { %549 = vmatprep.subr.bf16.mxu0 %v611_v1  ;;  %553 = vmatprep.mubr.msk.bf16.mxu0 %vm612_vm0, %v611_v1  ;;  %s534_s26 = sshll.u32 %s704_s18, 2  ;;  %v538_v4 = vld [vmem:[%s695_s2] ss:$0 sm:$0xff]  ;;  %vm359_vm2 = vcmask 257024  }
   0xe   : > { %550 = vmatpush3.bf16.msra.mxu0 %v585_v0  ;;  %s266_s29 = scalar_lea.vmem %s693_s0, %s534_s26  ;;  %s273_s9 = scalar_lea.vmem %s696_s3, %s534_s26 }
   0xf   : > { %551 = vmatprep.subr.bf16.mxu0 %v611_v1  ;;  %v289_v3 = vld [vmem:[%s266_s29] sm:$0xf]  ;;  %s280_s14 = scalar_lea.vmem %s697_s4, %s534_s26  ;;  %s287_s17 = scalar_lea.vmem %s698_s5, %s534_s26 }
  0x12   : > { %552 = vmatpush3.bf16.msra.mxu0 %v586_v2 }
  0x15   : > { %554 = vmatmul.mubr.msk.bf16.vlgmr.msra.gmra.mxu0 %vm313_vm1, %v289_v3 }
  0xd5   : > { %v351_v5 = vpop.f32.mrf.mxu0 }
  0xd6   : > { %v352_v6 = vadd.f32 %v538_v4, %v351_v5 }
  0xd7   : > { %v555_v7 = vpop.f32.mrf.mxu0 }
  0xd8   : > { %v357_v8 = vmul.f32 0.35355338, %v352_v6  ;;  %v545_v9 = vpack.c.bf16 %v352_v6, %v352_v6 }
  0xd9   : > { %v354_v10 = vpop.f32.mrf.mxu0 }
  0xda   : > { %v358_v11 = vpack.c.bf16 %v357_v8, %v357_v8  ;;  %365 = vrot.lane.b32.xlu0 %v545_v9, %s613_s10 }
  0xdb   : > { %v556_v12 = vpop.f32.mrf.mxu0 }
  0xdc   : > { %360 = vst.msk [vmem:[%s273_s9] sm:$0xf] %vm359_vm2, %v358_v11 }
  0xde   : > { %369 = vrot.lane.b32.xlu0 %v545_v9, %s614_s11 }
 0x14c   : > { %v366_v13 = vpop.permute.xlu0 %365 }
 0x14d   : > { %368 = vst.msk [vmem:[%s280_s14] sm:$0xf] %vm359_vm2, %v366_v13 }
 0x150   : > { %v370_v14 = vpop.permute.xlu0 %369 }
 0x151   : > { %372 = vst.msk [vmem:[%s287_s17] sm:$0xf] %vm359_vm2, %v370_v14 }
 0x152 PF: > { %s16_s20 = sadd.s32 1, %s609_s20   ;;  %s699_s18 = smov %s605_s19 }
 0x153   : > { %p13_p5 = scmp.ge.s32.totalorder %s16_s20, 4   ;;  %s700_s19 = smov %s702_s21 }
 0x155   :  { %15 = sbr.rel (!%p13_p5) target bundleno = 2 (0x2), region = 86 }

// kernel: attention_forward.3
= control target key start
LH: loop header
LB: loop body
LE: loop exit
PB: predicated region body
PF: predicated region fallthrough
CT: control target
= control target key end

     0   :  { %10 = vsyncpa [#allocation6], 0  ;;  %s2431_s0 = inlined_call_operand.vmem [shape: bf16[2,4,8,8], index: 0, kind: input, shape index: {}]   ;;  %s2432_s1 = inlined_call_operand.vmem [shape: bf16[2,4,8,8], index: 1, kind: input, shape index: {}]   ;;  %s2433_s2 = inlined_call_operand.vmem [shape: bf16[2,4,8,8], index: 2, kind: input, shape index: {}]   ;;  %s2434_s3 = inlined_call_operand.vmem [shape: bf16[4,8,32], index: 3, kind: input, shape index: {}]   ;;  %s2435_s4 = inlined_call_operand.vmem [shape: f32[1,32], index: 4, kind: input, shape index: {}]   ;;  %s2436_s5 = inlined_call_operand.hbm [shape: f32[2,8,32], index: 5, kind: output, shape index: {}]  }
   0x1   :  { %12 = vsyncpa [#allocation6 + $0x1], 0  ;;  %s2128_s18 = smov 0   ;;  %s2130_s19 = smov 0  }
   0x2   :  { %s2132_s20 = smov 0   ;;  %s2134_s21 = smov 0  }
   0x3   :  { %s2136_s22 = smov 0   ;;  %s2138_s23 = smov 0  }
   0x4 LB: > { %s1794_s24 = sadd.s32 4294967295, %s2091_s23   ;;  %s1795_s25 = sadd.s32 4294967294, %s2091_s23   ;;  %s2091_s23 = sphi %s2138_s23, %s18_s23   ;;  %s2087_s22 = sphi %s2136_s22, %s2443_s22   ;;  %s2083_s21 = sphi %s2134_s21, %s2442_s21   ;;  %s2079_s20 = sphi %s2132_s20, %s2441_s20   ;;  %s2075_s19 = sphi %s2130_s19, %s2440_s19   ;;  %s2071_s18 = sphi %s2128_s18, %s2439_s18  }
   0x5   : > { %s37_s26 = sadd.s32 1, %s2087_s22  ;;  %s180_s27 = sadd.s32 1, %s2079_s20 }
   0x6   : > { %p39_p0 = scmp.ge.s32.totalorder %s37_s26, 2  ;;  %p190_p1 = scmp.ne.s32.totalorder %s2079_s20, %s2075_s19 }
   0x7   : > { %p191_p2 = scmp.eq.s32.totalorder %s1794_s24, 1  ;;  %p196_p3 = scmp.ne.s32.totalorder %s2075_s19, %s2071_s18 }
   0x8   : > { %s2445_s26 = smov (%p39_p0, %s37_s26), 0  ;;  %p197_p5 = scmp.eq.s32.totalorder %s1795_s25, 1 }
   0x9   : > { %p2168_p4 = por %p191_p2, %p190_p1  ;;  %s175_s29 = ssub.s32 %s2087_s22, %s2445_s26 }
   0xa   : > { %p1798_p6 = scmp.ge.s32.totalorder %s2091_s23, 1  ;;  %p178_p7 = scmp.eq.s32.totalorder %s175_s29, 0 }
   0xb   : > { %p2175_p8 = por %p197_p5, %p196_p3  ;;  %p262_p9 = scmp.lt.s32.totalorder %s2091_s23, 3 }
   0xc   : > { %s2181_s6 = scalar_select %p178_p7, %s2079_s20, %s180_s27  }
   0xd   : > { %p263_p10 = pnand %p1798_p6, %p262_p9 }
   0xe   : > { %p313_p11 = scmp.lt.s32.totalorder (!%p263_p10), %s2083_s21, 1  ;;  %s1828_s15 = sshll.u32 (!%p263_p10), %s2083_s21, 7 }
   0xf   : > { %266 = sbr.rel (%p263_p10) target bundleno = 1020 (0x3fc), region = 40  ;;  %s2388_s27 = scalar_lea.hbm (!%p263_p10), %s2436_s5, %s1828_s15 }
  0x14   : > { %vm359_vm0 = vcmask 64512   ;;  %v2093_v0 = vmov 0.0   ;;  %s314_s7 = scalar_select %p313_p11, %s2083_s21, 1  ;;  %vm2094_vm1 = vmmov 0   ;;  %vm907_vm2 = vcmask 1043456  }
  0x15   : > { %1858 = vmatprep.subr.bf16.mxu0 %v2093_v0  ;;  %1864 = vmatprep.subr.bf16.mxu1 %v2093_v0  ;;  %360 = vst.msk [vmem:[#allocation4] sm:$0xff] %vm359_vm0, %v2093_v0  ;;  %361 = vst.msk [vmem:[#allocation4 + $0x8] sm:$0xff] %vm359_vm0, %v2093_v0  ;;  %vm350_vm3 = vcmask 7168   ;;  %v2095_v13 = vmov -1e+30   ;;  %v1089_v14 = vlaneseq  ;;  %v2096_v41 = vmov 0  }
  0x16   : > { %362 = vst.msk [vmem:[#allocation4 + $0x10] sm:$0xff] %vm359_vm0, %v2093_v0  ;;  %363 = vst.msk [vmem:[#allocation4 + $0x18] sm:$0xff] %vm359_vm0, %v2093_v0  ;;  %1860 = vmatprep.mubr.msk.bf16.mxu0 %vm2094_vm1, %v2093_v0  ;;  %1866 = vmatprep.mubr.msk.bf16.mxu1 %vm2094_vm1, %v2093_v0  ;;  %s2199_s8 = sshll.u32 %s314_s7, 4  ;;  %vm1649_vm5 = vcmask 261120   ;;  %s2097_s21 = smov [#allocation5]  }
  0x17   : > { %s330_s11 = scalar_lea.vmem %s2432_s1, %s2199_s8  ;;  %s320_s14 = scalar_lea.vmem %s2431_s0, %s2199_s8  ;;  %351 = vst.msk [vmem:[#allocation2] sm:$0xff] %vm350_vm3, %v2095_v13  ;;  %352 = vst.msk [vmem:[#allocation2 + $0x8] sm:$0xff] %vm350_vm3, %v2095_v13  ;;  %v1090_v15 = vshrl.u32 %v1089_v14, 7  ;;  %v1092_v16 = vand.u32 127, %v1089_v14  ;;  %1989 = vset.pattern.permute.xlu0 %v2096_v41  ;;  %1990 = vset.pattern.permute.xlu1 %v2096_v41 }
  0x18   : > { %v895_v1 = vld [vmem:[%s330_s11] sm:$0xf]  ;;  %v896_v2 = vld [vmem:[%s330_s11 + $0x4] sm:$0xf]  ;;  %v897_v5 = vld [vmem:[%s330_s11 + $0x8] sm:$0xf]  ;;  %s2294_s17 = scalar_lea.vmem %s2433_s2, %s2199_s8 }
  0x19   : > { %v909_v3 = vsel %vm907_vm2, %v895_v1, 0  ;;  %v955_v4 = vsel %vm907_vm2, %v896_v2, 0  ;;  %v891_v6 = vld [vmem:[%s320_s14] sm:$0xf]  ;;  %v892_v7 = vld [vmem:[%s320_s14 + $0x4] sm:$0xf]  ;;  %vm1093_vm4 = vcmp.le.s32.totalorder %v1092_v16, %v1090_v15 }
  0x1a   : > { %1859 = vmatpush3.bf16.msra.mxu0 %v909_v3  ;;  %1865 = vmatpush3.bf16.msra.mxu1 %v955_v4  ;;  %v898_v8 = vld [vmem:[%s330_s11 + $0xc] sm:$0xf]  ;;  %v1001_v9 = vsel %vm907_vm2, %v897_v5, 0  ;;  %v893_v11 = vld [vmem:[%s320_s14 + $0x8] sm:$0xf]  ;;  %353 = vst.msk [vmem:[#allocation2 + $0x10] sm:$0xff] %vm350_vm3, %v2095_v13 }
  0x1b   : > { %1870 = vmatprep.subr.bf16.mxu0 %v2093_v0  ;;  %1876 = vmatprep.subr.bf16.mxu1 %v2093_v0  ;;  %v1047_v10 = vsel %vm907_vm2, %v898_v8, 0  ;;  %v894_v12 = vld [vmem:[%s320_s14 + $0xc] sm:$0xf]  ;;  %354 = vst.msk [vmem:[#allocation2 + $0x18] sm:$0xff] %vm350_vm3, %v2095_v13  ;;  %355 = vst.msk [vmem:[#allocation3] sm:$0xff] %vm350_vm3, %v2093_v0  ;;  %s310_s11 = sand.u32 1, %s2075_s19  }
  0x1c   : > { %356 = vst.msk [vmem:[#allocation3 + $0x8] sm:$0xff] %vm350_vm3, %v2093_v0  ;;  %357 = vst.msk [vmem:[#allocation3 + $0x10] sm:$0xff] %vm350_vm3, %v2093_v0  ;;  %v899_v57 = vld [vmem:[%s2294_s17] sm:$0xf]  ;;  %v900_v60 = vld [vmem:[%s2294_s17 + $0x4] sm:$0xf] }
  0x1d   : > { %1861 = vmatmul.mubr.msk.bf16.vlgmr.msra.gmra.mxu0 %vm359_vm0, %v891_v6  ;;  %1867 = vmatmul.mubr.msk.bf16.vlgmr.msra.gmra.mxu1 %vm359_vm0, %v892_v7  ;;  %358 = vst.msk [vmem:[#allocation3 + $0x18] sm:$0xff] %vm350_vm3, %v2093_v0  ;;  %v1229_v59 = vsel %vm907_vm2, %v899_v57, 0  ;;  %v1275_v61 = vsel %vm907_vm2, %v900_v60, 0  ;;  %v902_v16 = vld [vmem:[%s2294_s17 + $0xc] sm:$0xf]  ;;  %s1799_s12 = sshll.u32 %s310_s11, 3 }
  0x1e   : > { %1871 = vmatpush3.bf16.msra.mxu0 %v1001_v9  ;;  %1877 = vmatpush3.bf16.msra.mxu1 %v1047_v10  ;;  %v2255_v42 = vld [vmem:[#allocation2] sm:$0xff]  ;;  %v2260_v45 = vld [vmem:[#allocation2 + $0x8] sm:$0xff]  ;;  %s312_s16 = scalar_lea.vmem [#allocation5], %s1799_s12  ;;  %s1667_s29 = scalar_lea.sflag [#allocation6], %s310_s11 }
  0x1f   : > { %1872 = vmatprep.mubr.msk.bf16.mxu0 %vm2094_vm1, %v2093_v0  ;;  %1878 = vmatprep.mubr.msk.bf16.mxu1 %vm2094_vm1, %v2093_v0  ;;  %v1462_v57 = vld [vmem:[%s2434_s3 + $0x4] sm:$0xf]  ;;  %s2019_s8 = sshll.u32 %s2097_s21, 4  ;;  %s2020_s8 = int_to_ptr.vmem [resolvable:$false] %s2019_s8 }
  0x20   : > { %1882 = vmatprep.subr.bf16.mxu0 %v2093_v0  ;;  %1888 = vmatprep.subr.bf16.mxu1 %v2093_v0  ;;  %s2021_s9 = scalar_lea.vmem %s2020_s8, 256 }
  0x21   : > { %v2270_v49 = vld [vmem:[#allocation2 + $0x10] sm:$0xff] }
  0x22   : > { %v2280_v53 = vld [vmem:[#allocation2 + $0x18] sm:$0xff] }
  0x25   : > { %1873 = vmatmul.mubr.msk.bf16.vlgmr.msra.gmra.mxu0 %vm359_vm0, %v893_v11  ;;  %1879 = vmatmul.mubr.msk.bf16.vlgmr.msra.gmra.mxu1 %vm359_vm0, %v894_v12  ;;  %v901_v11 = vld [vmem:[%s2294_s17 + $0x8] sm:$0xf]  ;;  %s1681_s17 = sshll.u32 %s312_s16, 4  ;;  %s1682_s17 = int_to_ptr.vmem [resolvable:$true] %s1681_s17 }
  0x26   : > { %1884 = vmatprep.mubr.msk.bf16.mxu0 %vm2094_vm1, %v2093_v0  ;;  %1890 = vmatprep.mubr.msk.bf16.mxu1 %vm2094_vm1, %v2093_v0  ;;  %v1321_v15 = vsel %vm907_vm2, %v901_v11, 0  ;;  %s2015_s7 = scalar_lea.vmem %s1682_s17, 128  ;;  %p2022_p1 = scmp.lt.s32.totalorder %s1682_s17, %s2020_s8 }
  0x27   : > { %1883 = vmatpush3.bf16.msra.mxu0 %v1229_v59  ;;  %1889 = vmatpush3.bf16.msra.mxu1 %v1275_v61  ;;  %v1515_v59 = vsel %vm907_vm2, %v1462_v57, 0  ;;  %p2016_p12 = scmp.ne.s32.totalorder %s1682_s17, %s2015_s7  ;;  %p2023_p2 = scmp.lt.s32.totalorder %s2021_s9, %s2015_s7 }
  0x28   : > { %1894 = vmatprep.subr.bf16.mxu0 %v2093_v0  ;;  %1900 = vmatprep.subr.bf16.mxu1 %v2093_v0 }
  0x29   : > { %p2017_p13 = pnand %p2016_p12, %p2168_p4  ;;  %p2024_p3 = por %p2023_p2, %p2022_p1 }
  0x2b   : > { %p2018_p0 = pneg %p2017_p13 }
  0x2d   : > { %p2025_p5 = pnand %p2024_p3, %p2018_p0 }
  0xdd   : > { %v945_v17 = vpop.f32.mrf.mxu0  ;;  %v991_v18 = vpop.f32.mrf.mxu1 }
  0xde   : > { %v2242_v19 = vsel %vm1093_vm4, %v945_v17, -10000.0  ;;  %v2245_v20 = vsel %vm1093_vm4, %v991_v18, -10000.0 }
  0xdf   : > { %v1862_v21 = vpop.f32.mrf.mxu0  ;;  %v1868_v22 = vpop.f32.mrf.mxu1  ;;  %v1104_v23 = vsel %vm359_vm0, %v2242_v19, -inf  ;;  %v1107_v26 = vsel %vm359_vm0, %v2245_v20, -inf }
  0xe0   : > { %1105 = vmax.xlane.f32.xlu0 %v1104_v23 }
  0xe1   : > { %v948_v24 = vpop.f32.mrf.mxu0  ;;  %v994_v25 = vpop.f32.mrf.mxu1 }
  0xe3   : > { %v1863_v27 = vpop.f32.mrf.mxu0  ;;  %v1869_v28 = vpop.f32.mrf.mxu1 }
  0xe4   : > { %1108 = vmax.xlane.f32.xlu0 %v1107_v26 }
  0xe5   : > { %v1037_v29 = vpop.f32.mrf.mxu0  ;;  %v1083_v30 = vpop.f32.mrf.mxu1 }
  0xe6   : > { %v1098_v31 = vsel %vm1093_vm4, %v1037_v29, -10000.0  ;;  %v1099_v32 = vsel %vm1093_vm4, %v1083_v30, -10000.0 }
  0xe7   : > { %v1874_v33 = vpop.f32.mrf.mxu0  ;;  %v1880_v34 = vpop.f32.mrf.mxu1  ;;  %v1110_v35 = vsel %vm359_vm0, %v1098_v31, -inf  ;;  %v1113_v38 = vsel %vm359_vm0, %v1099_v32, -inf }
  0xe8   : > { %1111 = vmax.xlane.f32.xlu1 %v1110_v35  ;;  %v1461_v35 = vld [vmem:[%s2434_s3] sm:$0xf] }
  0xe9   : > { %v1040_v36 = vpop.f32.mrf.mxu0  ;;  %v1086_v37 = vpop.f32.mrf.mxu1 }
  0xea   : > { %v1469_v36 = vsel %vm907_vm2, %v1461_v35, 0  ;;  %v1164_v37 = vld [vmem:[#allocation3] sm:$0xff] }
  0xeb   : > { %v1875_v39 = vpop.f32.mrf.mxu0  ;;  %v1881_v40 = vpop.f32.mrf.mxu1 }
  0xec   : > { %1114 = vmax.xlane.f32.xlu1 %v1113_v38  ;;  %v1165_v40 = vld [vmem:[#allocation3 + $0x8] sm:$0xff] }
 0x169   : > { %v1106_v43 = vpop.xlane.xlu0 %1105 }
 0x16a   : > { %v2258_v44 = vmax.f32 %v2255_v42, %v1106_v43 }
 0x16c   : > { %v1120_v46 = vsub.f32 %v2255_v42, %v2258_v44  ;;  %1417 = vst.msk [vmem:[#allocation2] sm:$0xff] %vm350_vm3, %v2258_v44  ;;  %1134 = vperm.xlu0 %1989, %v2258_v44   ;;  %v1166_v44 = vld [vmem:[#allocation3 + $0x10] sm:$0xff] }
 0x16d   : > { %v1109_v47 = vpop.xlane.xlu0 %1108 }
 0x16e   : > { %v2268_v48 = vmax.f32 %v2260_v45, %v1109_v47  ;;  %v1124_v26 = vmul.f32 1.442695, %v1120_v46 }
 0x170   : > { %v1121_v50 = vsub.f32 %v2260_v45, %v2268_v48  ;;  %1418 = vst.msk [vmem:[#allocation2 + $0x8] sm:$0xff] %vm350_vm3, %v2268_v48  ;;  %1139 = vperm.xlu1 %1990, %v2268_v48   ;;  %v1167_v48 = vld [vmem:[#allocation3 + $0x18] sm:$0xff] }
 0x171   : > { %v1112_v51 = vpop.xlane.xlu1 %1111 }
 0x172   : > { %v2278_v52 = vmax.f32 %v2270_v49, %v1112_v51  ;;  %v1126_v24 = vmul.f32 1.442695, %v1121_v50 }
 0x174   : > { %v1122_v54 = vsub.f32 %v2270_v49, %v2278_v52  ;;  %1419 = vst.msk [vmem:[#allocation2 + $0x10] sm:$0xff] %vm350_vm3, %v2278_v52  ;;  %1144 = vperm.xlu1 %1990, %v2278_v52  }
 0x175   : > { %v1115_v55 = vpop.xlane.xlu1 %1114 }
 0x176   : > { %v2288_v56 = vmax.f32 %v2280_v53, %v1115_v55  ;;  %v1128_v29 = vmul.f32 1.442695, %v1122_v54 }
 0x178   : > { %v1123_v58 = vsub.f32 %v2280_v53, %v2288_v56  ;;  %1420 = vst.msk [vmem:[#allocation2 + $0x18] sm:$0xff] %vm350_vm3, %v2288_v56  ;;  %1149 = vperm.xlu1 %1990, %v2288_v56  }
 0x17a   : > { %v1130_v30 = vmul.f32 1.442695, %v1123_v58 }
 0x1e7   : > { %v1135_v62 = vpop.permute.xlu0 %1134 }
 0x1e8   : > { %v1152_v63 = vsub.f32 %v2242_v19, %v1135_v62 }
 0x1ea   : > { %v1156_v1 = vmul.f32 1.442695, %v1152_v63 }
 0x1eb   : > { %v1140_v2 = vpop.permute.xlu1 %1139 }
 0x1ec   : > { %1991 = vpow2.f32 %v1156_v1  ;;  %v1153_v3 = vsub.f32 %v2245_v20, %v1140_v2  ;;  %v1367_v20 = vsel %vm907_vm2, %v902_v16, 0  ;;  %v1193_v1 = vld [vmem:[#allocation4] sm:$0xff] }
 0x1ee   : > { %v1158_v4 = vmul.f32 1.442695, %v1153_v3  ;;  %v1194_v3 = vld [vmem:[#allocation4 + $0x8] sm:$0xff] }
 0x1ef   : > { %v1145_v5 = vpop.permute.xlu1 %1144 }
 0x1f0   : > { %1993 = vpow2.f32 %v1158_v4  ;;  %v1154_v6 = vsub.f32 %v1098_v31, %v1145_v5 }
 0x1f2   : > { %v1160_v7 = vmul.f32 1.442695, %v1154_v6 }
 0x1f3   : > { %v1150_v8 = vpop.permute.xlu1 %1149 }
 0x1f4   : > { %1995 = vpow2.f32 %v1160_v7  ;;  %v1155_v9 = vsub.f32 %v1099_v32, %v1150_v8 }
 0x1f6   : > { %v1162_v10 = vmul.f32 1.442695, %v1155_v9 }
 0x1f8   : > { %1997 = vpow2.f32 %v1162_v10  ;;  %v1195_v10 = vld [vmem:[#allocation4 + $0x10] sm:$0xff] }
 0x1f9   : > { %v1992_v12 = vpop.eup %1991  ;;  %1999 = vpow2.f32 %v1126_v24 }
 0x1fa   : > { %v1172_v13 = vsel %vm359_vm0, %v1992_v12, 0.0  ;;  %v1221_v14 = vpack.c.bf16 %v1992_v12, %v1992_v12  ;;  %2001 = vpow2.f32 %v1124_v26 }
 0x1fb   : > { %1173 = vadd.xlane.f32.xlu1 %v1172_v13  ;;  %2003 = vpow2.f32 %v1128_v29 }
 0x1fc   : > { %1885 = vmatmul.mubr.msk.bf16.vlgmr.msra.gmra.mxu0 %vm359_vm0, %v1221_v14  ;;  %2005 = vpow2.f32 %v1130_v30 }
 0x1fd   : > { %v1994_v17 = vpop.eup %1993  ;;  %1895 = vmatpush3.bf16.msra.mxu0 %v1321_v15  ;;  %1896 = vmatprep.mubr.msk.bf16.mxu0 %vm2094_vm1, %v2093_v0 }
 0x1fe   : > { %v1175_v18 = vsel %vm359_vm0, %v1994_v17, 0.0  ;;  %v1222_v19 = vpack.c.bf16 %v1994_v17, %v1994_v17  ;;  %1906 = vmatprep.subr.bf16.mxu0 %v2093_v0 }
 0x1ff   : > { %1176 = vadd.xlane.f32.xlu0 %v1175_v18  ;;  %v1196_v18 = vld [vmem:[#allocation4 + $0x18] sm:$0xff] }
 0x200   : > { %1891 = vmatmul.mubr.msk.bf16.vlgmr.msra.gmra.mxu1 %vm359_vm0, %v1222_v19 }
 0x201   : > { %v1996_v21 = vpop.eup %1995  ;;  %1901 = vmatpush3.bf16.msra.mxu1 %v1367_v20  ;;  %1902 = vmatprep.mubr.msk.bf16.mxu1 %vm2094_vm1, %v2093_v0 }
 0x202   : > { %v1178_v22 = vsel %vm359_vm0, %v1996_v21, 0.0  ;;  %v1223_v23 = vpack.c.bf16 %v1996_v21, %v1996_v21  ;;  %1912 = vmatprep.subr.bf16.mxu1 %v2093_v0 }
 0x203   : > { %1179 = vadd.xlane.f32.xlu1 %v1178_v22 }
 0x204   : > { %1897 = vmatmul.mubr.msk.bf16.vlgmr.msra.gmra.mxu0 %vm359_vm0, %v1223_v23 }
 0x205   : > { %v1998_v25 = vpop.eup %1997  ;;  %1908 = vmatprep.mubr.msk.bf16.mxu0 %vm2094_vm1, %v2093_v0  ;;  %1907 = vmatpush3.bf16.msra.mxu0 %v1469_v36 }
 0x206   : > { %v1181_v27 = vsel %vm359_vm0, %v1998_v25, 0.0  ;;  %v1224_v28 = vpack.c.bf16 %v1998_v25, %v1998_v25  ;;  %v2000_v31 = vpop.eup %1999  ;;  %1918 = vmatprep.subr.bf16.mxu0 %v2093_v0 }
 0x207   : > { %1182 = vadd.xlane.f32.xlu1 %v1181_v27  ;;  %v2002_v32 = vpop.eup %2001  ;;  %v1169_v42 = vmul.f32 %v2000_v31, %v1165_v40  ;;  %v1464_v40 = vld [vmem:[%s2434_s3 + $0xc] sm:$0xf] }
 0x208   : > { %1903 = vmatmul.mubr.msk.bf16.vlgmr.msra.gmra.mxu1 %vm359_vm0, %v1224_v28  ;;  %v2004_v33 = vpop.eup %2003  ;;  %v1168_v38 = vmul.f32 %v2002_v32, %v1164_v37 }
 0x209   : > { %1914 = vmatprep.mubr.msk.bf16.mxu1 %vm2094_vm1, %v2093_v0  ;;  %v2006_v34 = vpop.eup %2005  ;;  %v1170_v46 = vmul.f32 %v2004_v33, %v1166_v44  ;;  %1913 = vmatpush3.bf16.msra.mxu1 %v1515_v59 }
 0x20a   : > { %v1171_v51 = vmul.f32 %v2006_v34, %v1167_v48  ;;  %1924 = vmatprep.subr.bf16.mxu1 %v2093_v0 }
 0x215   : > { %1204 = vperm.xlu0 %1989, %v2000_v31  }
 0x218   : > { %1199 = vperm.xlu1 %1990, %v2002_v32  }
 0x21c   : > { %1209 = vperm.xlu1 %1990, %v2004_v33  }
 0x220   : > { %1214 = vperm.xlu1 %1990, %v2006_v34   ;;  %v1463_v34 = vld [vmem:[%s2434_s3 + $0x8] sm:$0xf] }
 0x221   : > { %v1561_v37 = vsel %vm907_vm2, %v1463_v34, 0 }
 0x284   : > { %v1174_v39 = vpop.xlane.xlu1 %1173 }
 0x285   : > { %v1184_v41 = vadd.f32 %v1174_v39, %v1168_v38 }
 0x287   : > { %1189 = vst.msk [vmem:[#allocation3] sm:$0xff] %vm350_vm3, %v1184_v41 }
 0x288   : > { %v1177_v43 = vpop.xlane.xlu0 %1176 }
 0x289   : > { %v1185_v45 = vadd.f32 %v1177_v43, %v1169_v42  ;;  %v1607_v43 = vsel %vm907_vm2, %v1464_v40, 0 }
 0x28b   : > { %1190 = vst.msk [vmem:[#allocation3 + $0x8] sm:$0xff] %vm350_vm3, %v1185_v45 }
 0x28c   : > { %v1180_v47 = vpop.xlane.xlu1 %1179 }
 0x28d   : > { %v1186_v49 = vadd.f32 %v1180_v47, %v1170_v46 }
 0x28e   : > { %v1425_v50 = vld [vmem:[#allocation3] sm:$0xff] }
 0x28f   : > { %1191 = vst.msk [vmem:[#allocation3 + $0x10] sm:$0xff] %vm350_vm3, %v1186_v49  ;;  %2007 = vrcp.f32 %v1425_v50 }
 0x290   : > { %v1183_v52 = vpop.xlane.xlu1 %1182  ;;  %v1205_v4 = vpop.permute.xlu0 %1204 }
 0x291   : > { %v1187_v53 = vadd.f32 %v1183_v52, %v1171_v51  ;;  %v1218_v9 = vmul.f32 %v1205_v4, %v1194_v3 }
 0x292   : > { %v1426_v54 = vld [vmem:[#allocation3 + $0x8] sm:$0xff] }
 0x293   : > { %1192 = vst.msk [vmem:[#allocation3 + $0x18] sm:$0xff] %vm350_vm3, %v1187_v53  ;;  %2009 = vrcp.f32 %v1426_v54 }
 0x294   : > { %v1200_v63 = vpop.permute.xlu1 %1199 }
 0x295   : > { %v1217_v2 = vmul.f32 %v1200_v63, %v1193_v1 }
 0x296   : > { %v1427_v55 = vld [vmem:[#allocation3 + $0x10] sm:$0xff] }
 0x297   : > { %2011 = vrcp.f32 %v1427_v55 }
 0x298   : > { %v1210_v6 = vpop.permute.xlu1 %1209 }
 0x299   : > { %v1219_v16 = vmul.f32 %v1210_v6, %v1195_v10  ;;  %v1826_v6 = vld [vmem:[%s2435_s4] ss:$0 sm:$0xff] }
 0x29a   : > { %v1428_v56 = vld [vmem:[#allocation3 + $0x18] sm:$0xff] }
 0x29b   : > { %2013 = vrcp.f32 %v1428_v56 }
 0x29c   : > { %v2008_v58 = vpop.eup %2007  ;;  %v1215_v17 = vpop.permute.xlu1 %1214 }
 0x29d   : > { %1435 = vperm.xlu1 %1990, %v2008_v58   ;;  %v1220_v24 = vmul.f32 %v1215_v17, %v1196_v18 }
 0x2a0   : > { %v2010_v60 = vpop.eup %2009 }
 0x2a1   : > { %1440 = vperm.xlu0 %1989, %v2010_v60  }
 0x2a4   : > { %v2012_v61 = vpop.eup %2011 }
 0x2a5   : > { %1445 = vperm.xlu1 %1990, %v2012_v61  }
 0x2a8   : > { %v2014_v62 = vpop.eup %2013 }
 0x2a9   : > { %1450 = vperm.xlu0 %1989, %v2014_v62  }
 0x2bc   : > { %v1265_v5 = vpop.f32.mrf.mxu0 }
 0x2bd   : > { %v1409_v7 = vadd.f32 %v1265_v5, %v1217_v2 }
 0x2be   : > { %v1886_v8 = vpop.f32.mrf.mxu0 }
 0x2bf   : > { %1413 = vst.msk [vmem:[#allocation4] sm:$0xff] %vm359_vm0, %v1409_v7 }
 0x2c0   : > { %v1268_v11 = vpop.f32.mrf.mxu0  ;;  %v1311_v12 = vpop.f32.mrf.mxu1 }
 0x2c1   : > { %v1410_v13 = vadd.f32 %v1311_v12, %v1218_v9 }
 0x2c2   : > { %v1887_v14 = vpop.f32.mrf.mxu0  ;;  %v1892_v15 = vpop.f32.mrf.mxu1 }
 0x2c3   : > { %1414 = vst.msk [vmem:[#allocation4 + $0x8] sm:$0xff] %vm359_vm0, %v1410_v13 }
 0x2c4   : > { %v1314_v19 = vpop.f32.mrf.mxu1  ;;  %v1357_v20 = vpop.f32.mrf.mxu0 }
 0x2c5   : > { %v1411_v21 = vadd.f32 %v1357_v20, %v1219_v16 }
 0x2c6   : > { %v1893_v22 = vpop.f32.mrf.mxu1  ;;  %v1898_v23 = vpop.f32.mrf.mxu0  ;;  %v1421_v33 = vld [vmem:[#allocation4] sm:$0xff] }
 0x2c7   : > { %1415 = vst.msk [vmem:[#allocation4 + $0x10] sm:$0xff] %vm359_vm0, %v1411_v21 }
 0x2c8   : > { %v1360_v25 = vpop.f32.mrf.mxu0  ;;  %v1403_v26 = vpop.f32.mrf.mxu1 }
 0x2c9   : > { %v1412_v27 = vadd.f32 %v1403_v26, %v1220_v24 }
 0x2ca   : > { %v1899_v28 = vpop.f32.mrf.mxu0  ;;  %v1904_v29 = vpop.f32.mrf.mxu1  ;;  %v1422_v38 = vld [vmem:[#allocation4 + $0x8] sm:$0xff] }
 0x2cb   : > { %1416 = vst.msk [vmem:[#allocation4 + $0x18] sm:$0xff] %vm359_vm0, %v1412_v27 }
 0x2cc   : > { %v1406_v30 = vpop.f32.mrf.mxu1 }
 0x2ce   : > { %v1905_v31 = vpop.f32.mrf.mxu1  ;;  %v1423_v45 = vld [vmem:[#allocation4 + $0x10] sm:$0xff] }
 0x2d2   : > { %v1424_v49 = vld [vmem:[#allocation4 + $0x18] sm:$0xff] }
 0x318   : > { %v1436_v32 = vpop.permute.xlu1 %1435 }
 0x319   : > { %v1453_v35 = vmul.f32 %v1436_v32, %v1421_v33 }
 0x31b   : > { %v1457_v36 = vpack.c.bf16 %v1453_v35, %v1453_v35 }
 0x31c   : > { %v1441_v39 = vpop.permute.xlu0 %1440 }
 0x31d   : > { %v1454_v41 = vmul.f32 %v1441_v39, %v1422_v38  ;;  %1909 = vmatmul.mubr.msk.bf16.vlgmr.msra.gmra.mxu0 %vm359_vm0, %v1457_v36 }
 0x31e   : > { %1919 = vmatpush3.bf16.msra.mxu0 %v1561_v37  ;;  %1920 = vmatprep.mubr.msk.bf16.mxu0 %vm2094_vm1, %v2093_v0 }
 0x31f   : > { %v1458_v42 = vpack.c.bf16 %v1454_v41, %v1454_v41 }
 0x320   : > { %v1446_v44 = vpop.permute.xlu1 %1445 }
 0x321   : > { %v1455_v46 = vmul.f32 %v1446_v44, %v1423_v45  ;;  %1915 = vmatmul.mubr.msk.bf16.vlgmr.msra.gmra.mxu1 %vm359_vm0, %v1458_v42 }
 0x322   : > { %1925 = vmatpush3.bf16.msra.mxu1 %v1607_v43  ;;  %1926 = vmatprep.mubr.msk.bf16.mxu1 %vm2094_vm1, %v2093_v0 }
 0x323   : > { %v1459_v47 = vpack.c.bf16 %v1455_v46, %v1455_v46 }
 0x324   : > { %v1451_v48 = vpop.permute.xlu0 %1450 }
 0x325   : > { %v1456_v50 = vmul.f32 %v1451_v48, %v1424_v49  ;;  %1921 = vmatmul.mubr.msk.bf16.vlgmr.msra.gmra.mxu0 %vm359_vm0, %v1459_v47 }
 0x327   : > { %v1460_v51 = vpack.c.bf16 %v1456_v50, %v1456_v50 }
 0x329   : > { %1927 = vmatmul.mubr.msk.bf16.vlgmr.msra.gmra.mxu1 %vm359_vm0, %v1460_v51 }
 0x3dd   : > { %v1505_v52 = vpop.f32.mrf.mxu0 }
 0x3de   : > { %v1650_v60 = vsel %vm1649_vm5, %v1505_v52, 0.0 }
 0x3df   : > { %v1910_v53 = vpop.f32.mrf.mxu0 }
 0x3e1   : > { %v1508_v54 = vpop.f32.mrf.mxu0  ;;  %v1551_v55 = vpop.f32.mrf.mxu1 }
 0x3e2   : > { %v1651_v0 = vsel %vm1649_vm5, %v1551_v55, 0.0 }
 0x3e3   : > { %v1911_v56 = vpop.f32.mrf.mxu0  ;;  %v1916_v57 = vpop.f32.mrf.mxu1  ;;  %v1652_v62 = vadd.f32 %v1651_v0, %v1650_v60 }
 0x3e5   : > { %v1554_v58 = vpop.f32.mrf.mxu1  ;;  %v1597_v59 = vpop.f32.mrf.mxu0 }
 0x3e6   : > { %v1653_v61 = vsel %vm1649_vm5, %v1597_v59, 0.0 }
 0x3e7   : > { %v1917_v63 = vpop.f32.mrf.mxu1  ;;  %v1922_v1 = vpop.f32.mrf.mxu0  ;;  %v1654_v2 = vadd.f32 %v1653_v61, %v1652_v62 }
 0x3e9   : > { %v1600_v3 = vpop.f32.mrf.mxu0  ;;  %v1643_v4 = vpop.f32.mrf.mxu1 }
 0x3ea   : > { %v1655_v5 = vsel %vm1649_vm5, %v1643_v4, 0.0 }
 0x3eb   : > { %v1656_v7 = vadd.f32 %v1655_v5, %v1654_v2  ;;  %v1923_v8 = vpop.f32.mrf.mxu0  ;;  %v1928_v9 = vpop.f32.mrf.mxu1 }
 0x3ed   : > { %v1664_v10 = vadd.f32 %v1826_v6, %v1656_v7  ;;  %v1646_v11 = vpop.f32.mrf.mxu1 }
 0x3ef   : > { %v1929_v12 = vpop.f32.mrf.mxu1  ;;  %1665 = vst.msk [vmem:[%s312_s16] sm:$0xff] %vm1649_vm5, %v1664_v10 }
 0x3f0   : > { %2028 = shalt.err (!%p2025_p5)
}
 0x3f1   : > { %s2029_s10 = scalar_lea.hbm %s2388_s27, 128  ;;  %s2033_s13 = scalar_lea.hbm %s2436_s5, 256 }
 0x3f2   : > { %p2030_p6 = scmp.ne.s32.totalorder %s2388_s27, %s2029_s10  ;;  %p2034_p10 = scmp.lt.s32.totalorder %s2388_s27, %s2436_s5 }
 0x3f3   : > { %p2035_p11 = scmp.lt.s32.totalorder %s2033_s13, %s2029_s10 }
 0x3f4   : > { %p2031_p7 = pnand %p2030_p6, %p2168_p4 }
 0x3f5   : > { %p2036_p12 = por %p2035_p11, %p2034_p10 }
 0x3f6   : > { %p2032_p9 = pneg %p2031_p7 }
 0x3f8   : > { %p2037_p13 = pnand %p2036_p12, %p2032_p9 }
 0x3fa   : > { %2040 = shalt.err (!%p2037_p13)
}
 0x3fb   : > { %1930 = dma.vmem_to_hbm [thread:$0]  (%p2168_p4), %s1682_s17, 128, %s2388_s27, %s1667_s29  }
 0x3fc PF: > { %p1936_p0 = scmp.ge.s32.totalorder %s2091_s23, 2  ;;  %s1693_s16 = sand.u32 1, %s2071_s18  }
 0x3fd   : > { %s1694_s24 = scalar_lea.sflag [#allocation6], %s1693_s16 }
 0x3fe   : > { %p1933_p1 = pnand %p1936_p0, %p2175_p8 }
 0x400   : > { %p1934_p2 = pneg %p1933_p1 }
 0x402   : > { %2066 = dma.done.wait (%p1934_p2), %s1694_s24, 128  }
 0x403   : > { %2068 = vsyncadd (%p1934_p2), %s1694_s24, 4294967168  ;;  %s18_s23 = sadd.s32 1, %s2091_s23   ;;  %s2439_s18 = smov %s2075_s19 }
 0x404   : > { %p15_p3 = scmp.ge.s32.totalorder %s18_s23, 4   ;;  %s2440_s19 = smov %s2079_s20 }
 0x405   : > { %s2441_s20 = smov %s2181_s6  ;;  %s2442_s21 = smov %s2087_s22 }
 0x406   : > { %s2443_s22 = smov %s2445_s26  ;;  %17 = sbr.rel (!%p15_p3) target bundleno = 4 (0x4), region = 93 }
 0x40b   :  { %1699 = vsyncpa [#allocation6], 1 }
 0x40c   :  { %1701 = vsyncpa [#allocation6 + $0x1], 1 }

</bundles_post_ra>
